<compile_context>
chip_gen: v7x
topology: tpu7x:2x2x1
jax: 0.10.0
libtpu: 0.0.40
codegen_flags: <defaults>
</compile_context>

<pallas_src>
import jax
import jax.numpy as jnp
from jax import lax
from jax.experimental import pallas as pl
from jax.experimental.pallas import tpu as pltpu

SCHARR_X = ((3.0, 0.0, -3.0), (10.0, 0.0, -10.0), (3.0, 0.0, -3.0))
SCHARR_Y = ((3.0, 10.0, 3.0), (0.0, 0.0, 0.0), (-3.0, -10.0, -3.0))
SOBEL_X = ((1.0, 0.0, -1.0), (2.0, 0.0, -2.0), (1.0, 0.0, -1.0))
SOBEL_Y = ((1.0, 2.0, 1.0), (0.0, 0.0, 0.0), (-1.0, -2.0, -1.0))

# Separable forms:  FX = col ⊗ [1, 0, -1],   FY = [1, 0, -1]^T ⊗ col
_SMOOTH = {"sobel": (1.0, 2.0, 1.0), "scharr": (3.0, 10.0, 3.0)}


def make_kernel(Nb, Ho, Wo, C, Co, ppad, smooth, mxu_dtype):
    WoC = Wo * C
    Ho3 = Ho + 2 * ppad - 2
    Wo3 = Wo + 2 * ppad - 2
    Wo3Co = Wo3 * Co
    c0, c1, c2 = smooth

    def kernel(x_ref, wdw_ref, bn_ref, wpw_ref, wpwl_ref, y_ref):
        bn = bn_ref[...]                 # (10, L) f32: packed scale/shift rows
        wdw = wdw_ref[...]               # (9, Wo*C) f32: width-tiled dw weights

        # Hoisted border-mask iotas (H = sublane axis, merged W*C = lane axis).
        idx_h = lax.broadcasted_iota(jnp.int32, (1, Ho, WoC), 1)
        idx_w = lax.broadcasted_iota(jnp.int32, (1, Ho, WoC), 2)

        def h_band(v, start, size):
            # rows [start, start+size) of v (zero-filled outside [0, Ho)).
            if start >= 0 and start + size <= Ho:
                return v if (start == 0 and size == Ho) else v[:, start:start + size, :]
            r = pltpu.roll(v, (-start) % Ho, axis=1)                     # XLU
            keep = (idx_h >= -start) & (idx_h < Ho - start)
            return jnp.where(keep, r, 0.0)

        def shift_w(v, b):
            # value at width w+b on the merged (w*C + c) lane axis, zero at borders.
            r = pltpu.roll(v, (-b * C) % WoC, axis=2)                    # XLU
            if b > 0:
                return jnp.where(idx_w < WoC - b * C, r, 0.0)
            return jnp.where(idx_w >= -b * C, r, 0.0)

        # ---- depthwise 3x3, stride 2, pad 1 (phase-split input, merged lanes) ----
        acc = jnp.zeros((Nb, Ho, WoC), jnp.float32)
        for dy in range(3):
            for dx in range(3):
                p = (dy & 1) * 2 + (dx & 1)
                sl = x_ref[:, p, dy // 2:dy // 2 + Ho, :].astype(jnp.float32)
                woff = (dx // 2) * C
                if woff:
                    sl = pltpu.roll(sl, sl.shape[-1] - woff, axis=2)     # XLU
                k = dy * 3 + dx
                acc = acc + sl[:, :, :WoC] * wdw[k:k + 1, :]
        # bn1 (dw bias folded) + relu
        out = jnp.maximum(acc * bn[0:1, :WoC] + bn[1:2, :WoC], 0.0)

        # ---- gradient magnitude: separable sobel/scharr via rolls + masks ----
        sv = c0 * h_band(out, -1, Ho) + c1 * out + c2 * h_band(out, 1, Ho)
        gx = shift_w(sv, -1) - shift_w(sv, 1) + bn[2:3, :WoC]
        sh = c0 * shift_w(out, -1) + c1 * out + c2 * shift_w(out, 1)
        gy = h_band(sh, -1, Ho) - h_band(sh, 1, Ho) + bn[3:4, :WoC]
        grad = jnp.sqrt(gx * gx + gy * gy)
        out = out + grad * bn[4:5, :WoC] + bn[5:6, :WoC]    # out + bn_grad(grad)

        # ---- 1x1 conv as ONE block-diagonal (Wo*C, Wo*C) MXU matmul ----
        flat = out.reshape(Nb * Ho, WoC).astype(mxu_dtype)
        pw = jnp.dot(flat, wpw_ref[...], preferred_element_type=jnp.float32)
        pw = jnp.maximum(pw * bn[6:7, :WoC] + bn[7:8, :WoC], 0.0)       # bn2 + relu
        pw3 = pw.reshape(Nb, Ho, WoC)

        # ---- conv_pwl 3x3 as 3 block-Toeplitz matmuls (lane-dense Wo3*Co out) ----
        bands = [h_band(pw3, dy - ppad, Ho3).reshape(Nb * Ho3, WoC).astype(mxu_dtype)
                 for dy in range(3)]
        acc3 = jnp.dot(bands[0], wpwl_ref[0], preferred_element_type=jnp.float32)
        acc3 = acc3 + jnp.dot(bands[1], wpwl_ref[1], preferred_element_type=jnp.float32)
        acc3 = acc3 + jnp.dot(bands[2], wpwl_ref[2], preferred_element_type=jnp.float32)
        y = acc3 * bn[8:9, :Wo3Co] + bn[9:10, :Wo3Co]       # bn3 (pwl bias folded)
        y_ref[...] = y.reshape(Nb, Ho3, Wo3Co)              # 128-lane dense store

    return kernel


def gradient_boost_block(x_nchw, params, *, pwl_stride=1, pwl_padding=1,
                         filter_type="sobel", compute_dtype=jnp.bfloat16,
                         block_n=None):
    assert pwl_stride == 1, "fused kernel implements pwl_stride=1 only"
    assert pwl_padding in (0, 1), "fused kernel implements pwl_padding in {0, 1}"
    N, C, H, W = x_nchw.shape
    assert H % 2 == 0 and W % 2 == 0
    Co = params["w_pwl"].shape[-1]
    ppad = pwl_padding
    Ho, Wo = H // 2, W // 2
    Ho3, Wo3 = Ho + 2 * ppad - 2, Wo + 2 * ppad - 2
    WoC, Wo3Co = Wo * C, Wo3 * Co
    mxu_dtype = jnp.dtype(compute_dtype)
    itm = mxu_dtype.itemsize

    # ---- fold conv biases + inference-mode BN into per-channel scale/shift ----
    def fold(bnp, bias, eps=1e-5):
        gamma, beta, mean, var = bnp
        s = (gamma / jnp.sqrt(var + eps)).astype(jnp.float32)
        return s, (beta + s * (bias - mean)).astype(jnp.float32)

    s1, t1 = fold(params["bn1"], params["b_dw"])
    sg, tg = fold(params["bn_grad"], jnp.zeros_like(params["b_gx"]))
    s2, t2 = fold(params["bn2"], params["b_pw"])
    s3, t3 = fold(params["bn3"], params["b_pwl"])

    # Pack all per-channel vectors, width-tiled onto the merged lane axis, into a
    # single (10, L) f32 array -> one DMA descriptor / one VMEM block.
    L = max(WoC, Wo3Co)

    def row(v, rep):
        v = jnp.tile(v.astype(jnp.float32), rep)
        return jnp.pad(v, (0, L - v.shape[0]))

    bnvec = jnp.stack([
        row(s1, Wo), row(t1, Wo),
        row(params["b_gx"], Wo), row(params["b_gy"], Wo),
        row(sg, Wo), row(tg, Wo),
        row(s2, Wo), row(t2, Wo),
        row(s3, Wo3), row(t3, Wo3)])

    # Depthwise weights, width-tiled: (3,3,C) -> (9, Wo*C)
    w_dw_t = jnp.tile(params["w_dw"].reshape(9, C).astype(jnp.float32), (1, Wo))

    # 1x1 conv as a block-diagonal (Wo*C, Wo*C) matrix: keeps the merged-lane
    # layout (no in-kernel minor-dim reshape) and widens the matmul N to Wo*C.
    w_pw_bd = jnp.kron(jnp.eye(Wo, dtype=jnp.float32),
                       params["w_pw"].astype(jnp.float32)).astype(mxu_dtype)

    # conv_pwl as 3 block-Toeplitz matrices (Wo*C, Wo3*Co): the 3 width taps are
    # fused into the contraction and the output lane axis is Wo3*Co (lane-dense).
    w_pwl = params["w_pwl"].astype(jnp.float32)              # (3, 3, C, Co) HWIO
    wi = jnp.arange(Wo)[:, None]
    wo = jnp.arange(Wo3)[None, :]
    dxm = wi - wo + ppad
    valid = (dxm >= 0) & (dxm <= 2)
    toep = []
    for dy in range(3):
        blk = w_pwl[dy][jnp.clip(dxm, 0, 2)]                 # (Wo, Wo3, C, Co)
        blk = jnp.where(valid[:, :, None, None], blk, 0.0)
        toep.append(jnp.transpose(blk, (0, 2, 1, 3)).reshape(WoC, Wo3Co))
    w_pwl_toep = jnp.stack(toep).astype(mxu_dtype)           # (3, Wo*C, Wo3*Co)

    # ---- input relayout: NCHW -> padded NHWC -> 4 stride-2 phases, W*C merged ----
    x = jnp.transpose(x_nchw, (0, 2, 3, 1))
    xp = jnp.pad(x, ((0, 0), (1, 1), (1, 1), (0, 0)))
    Hp, Wp = Ho + 1, Wo + 1
    xph = jnp.stack([xp[:, 0::2, 0::2, :], xp[:, 0::2, 1::2, :],
                     xp[:, 1::2, 0::2, :], xp[:, 1::2, 1::2, :]], axis=1)
    xph = xph.reshape(N, 4, Hp, Wp * C).astype(mxu_dtype)

    # ---- block_n: largest divisor of N that fits VMEM, keeping >= 2 grid steps
    # so the second TensorCore on v7x has work; vmem limit raised explicitly. ----
    try:
        vmem_cap = int(pltpu.get_tpu_info().vmem_capacity_bytes)
    except Exception:
        vmem_cap = 64 * 1024 * 1024                          # conservative (v7x)
    vmem_limit = int(min(0.85 * vmem_cap, 112 * 2 ** 20))
    weight_bytes = ((w_pw_bd.size + w_pwl_toep.size) * itm
                    + (bnvec.size + w_dw_t.size) * 4)
    per_sample = (2 * 4 * Hp * Wp * C * itm                  # input block (x2 buf)
                  + 2 * Ho3 * Wo3Co * 4                      # output block (x2 buf)
                  + 12 * Ho * WoC * 4)                       # live f32 intermediates
    budget = max(per_sample, vmem_limit - 2 * weight_bytes - (2 << 20))
    if block_n is None:
        block_n = 1
        for nb in range(1, min(N, 8) + 1):
            if N % nb:
                continue
            if nb * per_sample > budget:
                continue
            if N >= 2 and N // nb < 2:
                continue                                     # keep >= 2 grid steps
            block_n = nb
    assert N % block_n == 0
    Nb = block_n

    smooth = _SMOOTH["sobel" if filter_type == "sobel" else "scharr"]
    kernel = make_kernel(Nb, Ho, Wo, C, Co, ppad, smooth, mxu_dtype)

    x_spec = pl.BlockSpec((Nb, 4, Hp, Wp * C), lambda n: (n, 0, 0, 0))

    def full_spec(a):
        return pl.BlockSpec(a.shape, lambda n, _nd=a.ndim: (0,) * _nd)

    weights = (w_dw_t, bnvec, w_pw_bd, w_pwl_toep)
    in_specs = [x_spec] + [full_spec(a) for a in weights]
    out_spec = pl.BlockSpec((Nb, Ho3, Wo3Co), lambda n: (n, 0, 0))

    y = pl.pallas_call(
        kernel,
        out_shape=jax.ShapeDtypeStruct((N, Ho3, Wo3Co), jnp.float32),
        grid_spec=pltpu.PrefetchScalarGridSpec(
            num_scalar_prefetch=0,
            grid=(N // Nb,),
            in_specs=in_specs,
            out_specs=out_spec),
        compiler_params=pltpu.CompilerParams(
            dimension_semantics=("parallel",),
            vmem_limit_bytes=vmem_limit),
    )(xph, *weights)

    y = y.reshape(N, Ho3, Wo3, Co)
    return jnp.transpose(y, (0, 3, 1, 2))                    # back to NCHW


# ---------------- deterministic synthetic parameter init ----------------
def init_params(key, C, Co):
    keys = jax.random.split(key, 12)

    def nrm(k, shape, scale=0.1):
        return scale * jax.random.normal(k, shape, jnp.float32)

    def bn_params(k, ch):
        k1, k2, k3, k4 = jax.random.split(k, 4)
        gamma = 1.0 + 0.1 * jax.random.normal(k1, (ch,), jnp.float32)
        beta = 0.1 * jax.random.normal(k2, (ch,), jnp.float32)
        mean = 0.1 * jax.random.normal(k3, (ch,), jnp.float32)
        var = 1.0 + 0.1 * jnp.abs(jax.random.normal(k4, (ch,), jnp.float32))
        return (gamma, beta, mean, var)

    return dict(
        w_dw=nrm(keys[0], (3, 3, C)),       # depthwise 3x3 weights (HWC)
        b_dw=nrm(keys[1], (C,)),
        b_gx=nrm(keys[2], (C,)),            # biases of the fixed-weight grad convs
        b_gy=nrm(keys[3], (C,)),
        w_pw=nrm(keys[4], (C, C)),          # 1x1 conv, (Cin, Cout)
        b_pw=nrm(keys[5], (C,)),
        w_pwl=nrm(keys[6], (3, 3, C, Co)),  # 3x3 conv, HWIO
        b_pwl=nrm(keys[7], (Co,)),
        bn1=bn_params(keys[8], C),
        bn_grad=bn_params(keys[9], C),
        bn2=bn_params(keys[10], C),
        bn3=bn_params(keys[11], Co),
    )


# ---------------- pure-JAX reference (for verification) ----------------
def reference(x_nchw, params, *, pwl_stride=1, pwl_padding=1, filter_type="sobel"):
    x = jnp.transpose(x_nchw, (0, 2, 3, 1)).astype(jnp.float32)
    C = x.shape[-1]
    dn = ("NHWC", "HWIO", "NHWC")
    hi = lax.Precision.HIGHEST

    def bn(v, p, eps=1e-5):
        g, b, m, var = p
        return (v - m) / jnp.sqrt(var + eps) * g + b

    out = lax.conv_general_dilated(x, params["w_dw"][:, :, None, :], (2, 2),
                                   ((1, 1), (1, 1)), dimension_numbers=dn,
                                   feature_group_count=C, precision=hi)
    out = out + params["b_dw"]
    out = jnp.maximum(bn(out, params["bn1"]), 0.0)

    fx = jnp.asarray(SOBEL_X if filter_type == "sobel" else SCHARR_X, jnp.float32)
    fy = jnp.asarray(SOBEL_Y if filter_type == "sobel" else SCHARR_Y, jnp.float32)
    wfx = jnp.tile(fx[:, :, None, None], (1, 1, 1, C))
    wfy = jnp.tile(fy[:, :, None, None], (1, 1, 1, C))
    gx = lax.conv_general_dilated(out, wfx, (1, 1), ((1, 1), (1, 1)),
                                  dimension_numbers=dn, feature_group_count=C,
                                  precision=hi) + params["b_gx"]
    gy = lax.conv_general_dilated(out, wfy, (1, 1), ((1, 1), (1, 1)),
                                  dimension_numbers=dn, feature_group_count=C,
                                  precision=hi) + params["b_gy"]
    grad = jnp.sqrt(gx * gx + gy * gy)
    out = out + bn(grad, params["bn_grad"])

    pw = jnp.einsum("nhwc,cd->nhwd", out, params["w_pw"], precision=hi) + params["b_pw"]
    pw = jnp.maximum(bn(pw, params["bn2"]), 0.0)

    p = pwl_padding
    y = lax.conv_general_dilated(pw, params["w_pwl"], (pwl_stride, pwl_stride),
                                 ((p, p), (p, p)), dimension_numbers=dn,
                                 precision=hi) + params["b_pwl"]
    y = bn(y, params["bn3"])
    return jnp.transpose(y, (0, 3, 1, 2))


if __name__ == "__main__":
    key = jax.random.PRNGKey(0)
    k_x, k_p = jax.random.split(key)

    N, C, H, W = 2, 8, 16, 16
    Co = 16
    x = jax.random.normal(k_x, (N, C, H, W), jnp.float32)
    params = init_params(k_p, C, Co)

    y_ref = reference(x, params, pwl_stride=1, pwl_padding=1, filter_type="sobel")
    assert y_ref.shape == (N, Co, H // 2, W // 2)

    # f32 path: exact-ish check against the reference.
    y32 = gradient_boost_block(x, params, pwl_stride=1, pwl_padding=1,
                               filter_type="sobel", compute_dtype=jnp.float32)
    y32 = jax.block_until_ready(y32)
    assert y32.shape == y_ref.shape, (y32.shape, y_ref.shape)
    err32 = float(jnp.max(jnp.abs(y32 - y_ref)))
    if not jnp.allclose(y32, y_ref, atol=2e-3, rtol=2e-3):
        raise AssertionError(f"f32 kernel/reference mismatch, max abs err = {err32}")

    # bf16 path (halved HBM traffic, native MXU dtype, f32 accumulation).
    y16 = gradient_boost_block(x, params, pwl_stride=1, pwl_padding=1,
                               filter_type="sobel", compute_dtype=jnp.bfloat16)
    y16 = jax.block_until_ready(y16)
    assert y16.shape == y_ref.shape, (y16.shape, y_ref.shape)
    err16 = float(jnp.max(jnp.abs(y16 - y_ref)))
    if not jnp.allclose(y16, y_ref, atol=1e-1, rtol=1e-1):
        raise AssertionError(f"bf16 kernel/reference mismatch, max abs err = {err16}")

    print("KERNEL_OK")
</pallas_src>

<mosaic_0001>
module attributes {stable_mosaic.version = 11 : i64} {
  func.func @kernel(%arg0: i32, %arg1: memref<1x4x9x72xf32, #tpu.memory_space<vmem>>, %arg2: memref<9x64xf32, #tpu.memory_space<vmem>>, %arg3: memref<10x128xf32, #tpu.memory_space<vmem>>, %arg4: memref<64x64xf32, #tpu.memory_space<vmem>>, %arg5: memref<3x64x128xf32, #tpu.memory_space<vmem>>, %arg6: memref<1x8x128xf32, #tpu.memory_space<vmem>>) attributes {dimension_semantics = [#tpu.dimension_semantics<parallel>], iteration_bounds = array<i64: 2>, scalar_prefetch = 0 : i64, scratch_operands = 0 : i64, tpu.core_type = #tpu.core_type<tc>, window_params = [{transform_indices = @transform_0, window_bounds = array<i64: 1, 4, 9, 72>}, {pipeline_mode = #tpu.pipeline_mode<synchronous>, transform_indices = @transform_1, window_bounds = array<i64: 9, 64>}, {pipeline_mode = #tpu.pipeline_mode<synchronous>, transform_indices = @transform_2, window_bounds = array<i64: 10, 128>}, {pipeline_mode = #tpu.pipeline_mode<synchronous>, transform_indices = @transform_3, window_bounds = array<i64: 64, 64>}, {pipeline_mode = #tpu.pipeline_mode<synchronous>, transform_indices = @transform_4, window_bounds = array<i64: 3, 64, 128>}, {transform_indices = @transform_5, window_bounds = array<i64: 1, 8, 128>}]} {
    %c0 = arith.constant 0 : index
    %c0_0 = arith.constant 0 : index
    %0 = vector.load %arg3[%c0, %c0_0] : memref<10x128xf32, #tpu.memory_space<vmem>>, vector<10x128xf32>
    %c0_1 = arith.constant 0 : index
    %c0_2 = arith.constant 0 : index
    %1 = vector.load %arg2[%c0_1, %c0_2] : memref<9x64xf32, #tpu.memory_space<vmem>>, vector<9x64xf32>
    %2 = tpu.iota {dimensions = array<i32: 1>} : vector<1x8x64xi32>
    %3 = tpu.iota {dimensions = array<i32: 2>} : vector<1x8x64xi32>
    %cst = arith.constant 0.000000e+00 : f32
    %4 = vector.broadcast %cst : f32 to vector<1x8x64xf32>
    %c0_3 = arith.constant 0 : index
    %c0_4 = arith.constant 0 : index
    %c0_5 = arith.constant 0 : index
    %c0_6 = arith.constant 0 : index
    %5 = vector.load %arg1[%c0_3, %c0_4, %c0_5, %c0_6] : memref<1x4x9x72xf32, #tpu.memory_space<vmem>>, vector<1x1x8x72xf32>
    %6 = vector.shape_cast %5 : vector<1x1x8x72xf32> to vector<1x8x72xf32>
    %7 = vector.extract_strided_slice %6 {offsets = [0, 0, 0], sizes = [1, 8, 64], strides = [1, 1, 1]} : vector<1x8x72xf32> to vector<1x8x64xf32>
    %8 = vector.extract_strided_slice %1 {offsets = [0, 0], sizes = [1, 64], strides = [1, 1]} : vector<9x64xf32> to vector<1x64xf32>
    %9 = vector.shape_cast %8 : vector<1x64xf32> to vector<1x1x64xf32>
    %10 = vector.broadcast %9 : vector<1x1x64xf32> to vector<1x8x64xf32>
    %11 = arith.mulf %7, %10 : vector<1x8x64xf32>
    %12 = arith.addf %4, %11 : vector<1x8x64xf32>
    %c0_7 = arith.constant 0 : index
    %c1 = arith.constant 1 : index
    %c0_8 = arith.constant 0 : index
    %c0_9 = arith.constant 0 : index
    %13 = vector.load %arg1[%c0_7, %c1, %c0_8, %c0_9] : memref<1x4x9x72xf32, #tpu.memory_space<vmem>>, vector<1x1x8x72xf32>
    %14 = vector.shape_cast %13 : vector<1x1x8x72xf32> to vector<1x8x72xf32>
    %15 = vector.extract_strided_slice %14 {offsets = [0, 0, 0], sizes = [1, 8, 64], strides = [1, 1, 1]} : vector<1x8x72xf32> to vector<1x8x64xf32>
    %16 = vector.extract_strided_slice %1 {offsets = [1, 0], sizes = [1, 64], strides = [1, 1]} : vector<9x64xf32> to vector<1x64xf32>
    %17 = vector.shape_cast %16 : vector<1x64xf32> to vector<1x1x64xf32>
    %18 = vector.broadcast %17 : vector<1x1x64xf32> to vector<1x8x64xf32>
    %19 = arith.mulf %15, %18 : vector<1x8x64xf32>
    %20 = arith.addf %12, %19 : vector<1x8x64xf32>
    %c0_10 = arith.constant 0 : index
    %c0_11 = arith.constant 0 : index
    %c0_12 = arith.constant 0 : index
    %c0_13 = arith.constant 0 : index
    %21 = vector.load %arg1[%c0_10, %c0_11, %c0_12, %c0_13] : memref<1x4x9x72xf32, #tpu.memory_space<vmem>>, vector<1x1x8x72xf32>
    %22 = vector.shape_cast %21 : vector<1x1x8x72xf32> to vector<1x8x72xf32>
    %c64_i32 = arith.constant 64 : i32
    %23 = tpu.dynamic_rotate %22 by %c64_i32 dim 2 : vector<1x8x72xf32>, i32 -> vector<1x8x72xf32>
    %24 = vector.extract_strided_slice %23 {offsets = [0, 0, 0], sizes = [1, 8, 64], strides = [1, 1, 1]} : vector<1x8x72xf32> to vector<1x8x64xf32>
    %25 = vector.extract_strided_slice %1 {offsets = [2, 0], sizes = [1, 64], strides = [1, 1]} : vector<9x64xf32> to vector<1x64xf32>
    %26 = vector.shape_cast %25 : vector<1x64xf32> to vector<1x1x64xf32>
    %27 = vector.broadcast %26 : vector<1x1x64xf32> to vector<1x8x64xf32>
    %28 = arith.mulf %24, %27 : vector<1x8x64xf32>
    %29 = arith.addf %20, %28 : vector<1x8x64xf32>
    %c0_14 = arith.constant 0 : index
    %c2 = arith.constant 2 : index
    %c0_15 = arith.constant 0 : index
    %c0_16 = arith.constant 0 : index
    %30 = vector.load %arg1[%c0_14, %c2, %c0_15, %c0_16] : memref<1x4x9x72xf32, #tpu.memory_space<vmem>>, vector<1x1x8x72xf32>
    %31 = vector.shape_cast %30 : vector<1x1x8x72xf32> to vector<1x8x72xf32>
    %32 = vector.extract_strided_slice %31 {offsets = [0, 0, 0], sizes = [1, 8, 64], strides = [1, 1, 1]} : vector<1x8x72xf32> to vector<1x8x64xf32>
    %33 = vector.extract_strided_slice %1 {offsets = [3, 0], sizes = [1, 64], strides = [1, 1]} : vector<9x64xf32> to vector<1x64xf32>
    %34 = vector.shape_cast %33 : vector<1x64xf32> to vector<1x1x64xf32>
    %35 = vector.broadcast %34 : vector<1x1x64xf32> to vector<1x8x64xf32>
    %36 = arith.mulf %32, %35 : vector<1x8x64xf32>
    %37 = arith.addf %29, %36 : vector<1x8x64xf32>
    %c0_17 = arith.constant 0 : index
    %c3 = arith.constant 3 : index
    %c0_18 = arith.constant 0 : index
    %c0_19 = arith.constant 0 : index
    %38 = vector.load %arg1[%c0_17, %c3, %c0_18, %c0_19] : memref<1x4x9x72xf32, #tpu.memory_space<vmem>>, vector<1x1x8x72xf32>
    %39 = vector.shape_cast %38 : vector<1x1x8x72xf32> to vector<1x8x72xf32>
    %40 = vector.extract_strided_slice %39 {offsets = [0, 0, 0], sizes = [1, 8, 64], strides = [1, 1, 1]} : vector<1x8x72xf32> to vector<1x8x64xf32>
    %41 = vector.extract_strided_slice %1 {offsets = [4, 0], sizes = [1, 64], strides = [1, 1]} : vector<9x64xf32> to vector<1x64xf32>
    %42 = vector.shape_cast %41 : vector<1x64xf32> to vector<1x1x64xf32>
    %43 = vector.broadcast %42 : vector<1x1x64xf32> to vector<1x8x64xf32>
    %44 = arith.mulf %40, %43 : vector<1x8x64xf32>
    %45 = arith.addf %37, %44 : vector<1x8x64xf32>
    %c0_20 = arith.constant 0 : index
    %c2_21 = arith.constant 2 : index
    %c0_22 = arith.constant 0 : index
    %c0_23 = arith.constant 0 : index
    %46 = vector.load %arg1[%c0_20, %c2_21, %c0_22, %c0_23] : memref<1x4x9x72xf32, #tpu.memory_space<vmem>>, vector<1x1x8x72xf32>
    %47 = vector.shape_cast %46 : vector<1x1x8x72xf32> to vector<1x8x72xf32>
    %c64_i32_24 = arith.constant 64 : i32
    %48 = tpu.dynamic_rotate %47 by %c64_i32_24 dim 2 : vector<1x8x72xf32>, i32 -> vector<1x8x72xf32>
    %49 = vector.extract_strided_slice %48 {offsets = [0, 0, 0], sizes = [1, 8, 64], strides = [1, 1, 1]} : vector<1x8x72xf32> to vector<1x8x64xf32>
    %50 = vector.extract_strided_slice %1 {offsets = [5, 0], sizes = [1, 64], strides = [1, 1]} : vector<9x64xf32> to vector<1x64xf32>
    %51 = vector.shape_cast %50 : vector<1x64xf32> to vector<1x1x64xf32>
    %52 = vector.broadcast %51 : vector<1x1x64xf32> to vector<1x8x64xf32>
    %53 = arith.mulf %49, %52 : vector<1x8x64xf32>
    %54 = arith.addf %45, %53 : vector<1x8x64xf32>
    %c0_25 = arith.constant 0 : index
    %c0_26 = arith.constant 0 : index
    %c1_27 = arith.constant 1 : index
    %c0_28 = arith.constant 0 : index
    %55 = vector.load %arg1[%c0_25, %c0_26, %c1_27, %c0_28] : memref<1x4x9x72xf32, #tpu.memory_space<vmem>>, vector<1x1x8x72xf32>
    %56 = vector.shape_cast %55 : vector<1x1x8x72xf32> to vector<1x8x72xf32>
    %57 = vector.extract_strided_slice %56 {offsets = [0, 0, 0], sizes = [1, 8, 64], strides = [1, 1, 1]} : vector<1x8x72xf32> to vector<1x8x64xf32>
    %58 = vector.extract_strided_slice %1 {offsets = [6, 0], sizes = [1, 64], strides = [1, 1]} : vector<9x64xf32> to vector<1x64xf32>
    %59 = vector.shape_cast %58 : vector<1x64xf32> to vector<1x1x64xf32>
    %60 = vector.broadcast %59 : vector<1x1x64xf32> to vector<1x8x64xf32>
    %61 = arith.mulf %57, %60 : vector<1x8x64xf32>
    %62 = arith.addf %54, %61 : vector<1x8x64xf32>
    %c0_29 = arith.constant 0 : index
    %c1_30 = arith.constant 1 : index
    %c1_31 = arith.constant 1 : index
    %c0_32 = arith.constant 0 : index
    %63 = vector.load %arg1[%c0_29, %c1_30, %c1_31, %c0_32] : memref<1x4x9x72xf32, #tpu.memory_space<vmem>>, vector<1x1x8x72xf32>
    %64 = vector.shape_cast %63 : vector<1x1x8x72xf32> to vector<1x8x72xf32>
    %65 = vector.extract_strided_slice %64 {offsets = [0, 0, 0], sizes = [1, 8, 64], strides = [1, 1, 1]} : vector<1x8x72xf32> to vector<1x8x64xf32>
    %66 = vector.extract_strided_slice %1 {offsets = [7, 0], sizes = [1, 64], strides = [1, 1]} : vector<9x64xf32> to vector<1x64xf32>
    %67 = vector.shape_cast %66 : vector<1x64xf32> to vector<1x1x64xf32>
    %68 = vector.broadcast %67 : vector<1x1x64xf32> to vector<1x8x64xf32>
    %69 = arith.mulf %65, %68 : vector<1x8x64xf32>
    %70 = arith.addf %62, %69 : vector<1x8x64xf32>
    %c0_33 = arith.constant 0 : index
    %c0_34 = arith.constant 0 : index
    %c1_35 = arith.constant 1 : index
    %c0_36 = arith.constant 0 : index
    %71 = vector.load %arg1[%c0_33, %c0_34, %c1_35, %c0_36] : memref<1x4x9x72xf32, #tpu.memory_space<vmem>>, vector<1x1x8x72xf32>
    %72 = vector.shape_cast %71 : vector<1x1x8x72xf32> to vector<1x8x72xf32>
    %c64_i32_37 = arith.constant 64 : i32
    %73 = tpu.dynamic_rotate %72 by %c64_i32_37 dim 2 : vector<1x8x72xf32>, i32 -> vector<1x8x72xf32>
    %74 = vector.extract_strided_slice %73 {offsets = [0, 0, 0], sizes = [1, 8, 64], strides = [1, 1, 1]} : vector<1x8x72xf32> to vector<1x8x64xf32>
    %75 = vector.extract_strided_slice %1 {offsets = [8, 0], sizes = [1, 64], strides = [1, 1]} : vector<9x64xf32> to vector<1x64xf32>
    %76 = vector.shape_cast %75 : vector<1x64xf32> to vector<1x1x64xf32>
    %77 = vector.broadcast %76 : vector<1x1x64xf32> to vector<1x8x64xf32>
    %78 = arith.mulf %74, %77 : vector<1x8x64xf32>
    %79 = arith.addf %70, %78 : vector<1x8x64xf32>
    %80 = vector.extract_strided_slice %0 {offsets = [0, 0], sizes = [1, 64], strides = [1, 1]} : vector<10x128xf32> to vector<1x64xf32>
    %81 = vector.shape_cast %80 : vector<1x64xf32> to vector<1x1x64xf32>
    %82 = vector.broadcast %81 : vector<1x1x64xf32> to vector<1x8x64xf32>
    %83 = arith.mulf %79, %82 : vector<1x8x64xf32>
    %84 = vector.extract_strided_slice %0 {offsets = [1, 0], sizes = [1, 64], strides = [1, 1]} : vector<10x128xf32> to vector<1x64xf32>
    %85 = vector.shape_cast %84 : vector<1x64xf32> to vector<1x1x64xf32>
    %86 = vector.broadcast %85 : vector<1x1x64xf32> to vector<1x8x64xf32>
    %87 = arith.addf %83, %86 : vector<1x8x64xf32>
    %cst_38 = arith.constant 0.000000e+00 : f32
    %88 = vector.broadcast %cst_38 : f32 to vector<1x8x64xf32>
    %89 = arith.maximumf %87, %88 : vector<1x8x64xf32>
    %c1_i32 = arith.constant 1 : i32
    %90 = tpu.dynamic_rotate %89 by %c1_i32 dim 1 : vector<1x8x64xf32>, i32 -> vector<1x8x64xf32>
    %c1_i32_39 = arith.constant 1 : i32
    %91 = vector.broadcast %c1_i32_39 : i32 to vector<1x8x64xi32>
    %92 = arith.cmpi sge, %2, %91 : vector<1x8x64xi32>
    %c9_i32 = arith.constant 9 : i32
    %93 = vector.broadcast %c9_i32 : i32 to vector<1x8x64xi32>
    %94 = arith.cmpi slt, %2, %93 : vector<1x8x64xi32>
    %95 = arith.andi %92, %94 : vector<1x8x64xi1>
    %cst_40 = arith.constant 0.000000e+00 : f32
    %96 = vector.broadcast %cst_40 : f32 to vector<1x8x64xf32>
    %97 = arith.select %95, %90, %96 : vector<1x8x64xi1>, vector<1x8x64xf32>
    %cst_41 = arith.constant 1.000000e+00 : f32
    %98 = vector.broadcast %cst_41 : f32 to vector<1x8x64xf32>
    %99 = arith.mulf %98, %97 : vector<1x8x64xf32>
    %cst_42 = arith.constant 2.000000e+00 : f32
    %100 = vector.broadcast %cst_42 : f32 to vector<1x8x64xf32>
    %101 = arith.mulf %100, %89 : vector<1x8x64xf32>
    %102 = arith.addf %99, %101 : vector<1x8x64xf32>
    %c7_i32 = arith.constant 7 : i32
    %103 = tpu.dynamic_rotate %89 by %c7_i32 dim 1 : vector<1x8x64xf32>, i32 -> vector<1x8x64xf32>
    %c-1_i32 = arith.constant -1 : i32
    %104 = vector.broadcast %c-1_i32 : i32 to vector<1x8x64xi32>
    %105 = arith.cmpi sge, %2, %104 : vector<1x8x64xi32>
    %c7_i32_43 = arith.constant 7 : i32
    %106 = vector.broadcast %c7_i32_43 : i32 to vector<1x8x64xi32>
    %107 = arith.cmpi slt, %2, %106 : vector<1x8x64xi32>
    %108 = arith.andi %105, %107 : vector<1x8x64xi1>
    %cst_44 = arith.constant 0.000000e+00 : f32
    %109 = vector.broadcast %cst_44 : f32 to vector<1x8x64xf32>
    %110 = arith.select %108, %103, %109 : vector<1x8x64xi1>, vector<1x8x64xf32>
    %cst_45 = arith.constant 1.000000e+00 : f32
    %111 = vector.broadcast %cst_45 : f32 to vector<1x8x64xf32>
    %112 = arith.mulf %111, %110 : vector<1x8x64xf32>
    %113 = arith.addf %102, %112 : vector<1x8x64xf32>
    %c8_i32 = arith.constant 8 : i32
    %114 = tpu.dynamic_rotate %113 by %c8_i32 dim 2 : vector<1x8x64xf32>, i32 -> vector<1x8x64xf32>
    %c8_i32_46 = arith.constant 8 : i32
    %115 = vector.broadcast %c8_i32_46 : i32 to vector<1x8x64xi32>
    %116 = arith.cmpi sge, %3, %115 : vector<1x8x64xi32>
    %cst_47 = arith.constant 0.000000e+00 : f32
    %117 = vector.broadcast %cst_47 : f32 to vector<1x8x64xf32>
    %118 = arith.select %116, %114, %117 : vector<1x8x64xi1>, vector<1x8x64xf32>
    %c56_i32 = arith.constant 56 : i32
    %119 = tpu.dynamic_rotate %113 by %c56_i32 dim 2 : vector<1x8x64xf32>, i32 -> vector<1x8x64xf32>
    %c56_i32_48 = arith.constant 56 : i32
    %120 = vector.broadcast %c56_i32_48 : i32 to vector<1x8x64xi32>
    %121 = arith.cmpi slt, %3, %120 : vector<1x8x64xi32>
    %cst_49 = arith.constant 0.000000e+00 : f32
    %122 = vector.broadcast %cst_49 : f32 to vector<1x8x64xf32>
    %123 = arith.select %121, %119, %122 : vector<1x8x64xi1>, vector<1x8x64xf32>
    %124 = arith.subf %118, %123 : vector<1x8x64xf32>
    %125 = vector.extract_strided_slice %0 {offsets = [2, 0], sizes = [1, 64], strides = [1, 1]} : vector<10x128xf32> to vector<1x64xf32>
    %126 = vector.shape_cast %125 : vector<1x64xf32> to vector<1x1x64xf32>
    %127 = vector.broadcast %126 : vector<1x1x64xf32> to vector<1x8x64xf32>
    %128 = arith.addf %124, %127 : vector<1x8x64xf32>
    %c8_i32_50 = arith.constant 8 : i32
    %129 = tpu.dynamic_rotate %89 by %c8_i32_50 dim 2 : vector<1x8x64xf32>, i32 -> vector<1x8x64xf32>
    %c8_i32_51 = arith.constant 8 : i32
    %130 = vector.broadcast %c8_i32_51 : i32 to vector<1x8x64xi32>
    %131 = arith.cmpi sge, %3, %130 : vector<1x8x64xi32>
    %cst_52 = arith.constant 0.000000e+00 : f32
    %132 = vector.broadcast %cst_52 : f32 to vector<1x8x64xf32>
    %133 = arith.select %131, %129, %132 : vector<1x8x64xi1>, vector<1x8x64xf32>
    %cst_53 = arith.constant 1.000000e+00 : f32
    %134 = vector.broadcast %cst_53 : f32 to vector<1x8x64xf32>
    %135 = arith.mulf %134, %133 : vector<1x8x64xf32>
    %cst_54 = arith.constant 2.000000e+00 : f32
    %136 = vector.broadcast %cst_54 : f32 to vector<1x8x64xf32>
    %137 = arith.mulf %136, %89 : vector<1x8x64xf32>
    %138 = arith.addf %135, %137 : vector<1x8x64xf32>
    %c56_i32_55 = arith.constant 56 : i32
    %139 = tpu.dynamic_rotate %89 by %c56_i32_55 dim 2 : vector<1x8x64xf32>, i32 -> vector<1x8x64xf32>
    %c56_i32_56 = arith.constant 56 : i32
    %140 = vector.broadcast %c56_i32_56 : i32 to vector<1x8x64xi32>
    %141 = arith.cmpi slt, %3, %140 : vector<1x8x64xi32>
    %cst_57 = arith.constant 0.000000e+00 : f32
    %142 = vector.broadcast %cst_57 : f32 to vector<1x8x64xf32>
    %143 = arith.select %141, %139, %142 : vector<1x8x64xi1>, vector<1x8x64xf32>
    %cst_58 = arith.constant 1.000000e+00 : f32
    %144 = vector.broadcast %cst_58 : f32 to vector<1x8x64xf32>
    %145 = arith.mulf %144, %143 : vector<1x8x64xf32>
    %146 = arith.addf %138, %145 : vector<1x8x64xf32>
    %c1_i32_59 = arith.constant 1 : i32
    %147 = tpu.dynamic_rotate %146 by %c1_i32_59 dim 1 : vector<1x8x64xf32>, i32 -> vector<1x8x64xf32>
    %c1_i32_60 = arith.constant 1 : i32
    %148 = vector.broadcast %c1_i32_60 : i32 to vector<1x8x64xi32>
    %149 = arith.cmpi sge, %2, %148 : vector<1x8x64xi32>
    %c9_i32_61 = arith.constant 9 : i32
    %150 = vector.broadcast %c9_i32_61 : i32 to vector<1x8x64xi32>
    %151 = arith.cmpi slt, %2, %150 : vector<1x8x64xi32>
    %152 = arith.andi %149, %151 : vector<1x8x64xi1>
    %cst_62 = arith.constant 0.000000e+00 : f32
    %153 = vector.broadcast %cst_62 : f32 to vector<1x8x64xf32>
    %154 = arith.select %152, %147, %153 : vector<1x8x64xi1>, vector<1x8x64xf32>
    %c7_i32_63 = arith.constant 7 : i32
    %155 = tpu.dynamic_rotate %146 by %c7_i32_63 dim 1 : vector<1x8x64xf32>, i32 -> vector<1x8x64xf32>
    %c-1_i32_64 = arith.constant -1 : i32
    %156 = vector.broadcast %c-1_i32_64 : i32 to vector<1x8x64xi32>
    %157 = arith.cmpi sge, %2, %156 : vector<1x8x64xi32>
    %c7_i32_65 = arith.constant 7 : i32
    %158 = vector.broadcast %c7_i32_65 : i32 to vector<1x8x64xi32>
    %159 = arith.cmpi slt, %2, %158 : vector<1x8x64xi32>
    %160 = arith.andi %157, %159 : vector<1x8x64xi1>
    %cst_66 = arith.constant 0.000000e+00 : f32
    %161 = vector.broadcast %cst_66 : f32 to vector<1x8x64xf32>
    %162 = arith.select %160, %155, %161 : vector<1x8x64xi1>, vector<1x8x64xf32>
    %163 = arith.subf %154, %162 : vector<1x8x64xf32>
    %164 = vector.extract_strided_slice %0 {offsets = [3, 0], sizes = [1, 64], strides = [1, 1]} : vector<10x128xf32> to vector<1x64xf32>
    %165 = vector.shape_cast %164 : vector<1x64xf32> to vector<1x1x64xf32>
    %166 = vector.broadcast %165 : vector<1x1x64xf32> to vector<1x8x64xf32>
    %167 = arith.addf %163, %166 : vector<1x8x64xf32>
    %168 = arith.mulf %128, %128 : vector<1x8x64xf32>
    %169 = arith.mulf %167, %167 : vector<1x8x64xf32>
    %170 = arith.addf %168, %169 : vector<1x8x64xf32>
    %171 = math.sqrt %170 : vector<1x8x64xf32>
    %172 = vector.extract_strided_slice %0 {offsets = [4, 0], sizes = [1, 64], strides = [1, 1]} : vector<10x128xf32> to vector<1x64xf32>
    %173 = vector.shape_cast %172 : vector<1x64xf32> to vector<1x1x64xf32>
    %174 = vector.broadcast %173 : vector<1x1x64xf32> to vector<1x8x64xf32>
    %175 = arith.mulf %171, %174 : vector<1x8x64xf32>
    %176 = arith.addf %89, %175 : vector<1x8x64xf32>
    %177 = vector.extract_strided_slice %0 {offsets = [5, 0], sizes = [1, 64], strides = [1, 1]} : vector<10x128xf32> to vector<1x64xf32>
    %178 = vector.shape_cast %177 : vector<1x64xf32> to vector<1x1x64xf32>
    %179 = vector.broadcast %178 : vector<1x1x64xf32> to vector<1x8x64xf32>
    %180 = arith.addf %176, %179 : vector<1x8x64xf32>
    %181 = vector.shape_cast %180 : vector<1x8x64xf32> to vector<8x64xf32>
    %c0_67 = arith.constant 0 : index
    %c0_68 = arith.constant 0 : index
    %182 = vector.load %arg4[%c0_67, %c0_68] : memref<64x64xf32, #tpu.memory_space<vmem>>, vector<64x64xf32>
    %cst_69 = arith.constant dense<0.000000e+00> : vector<8x64xf32>
    %183 = tpu.matmul %181, %182, %cst_69 {dimension_numbers = #tpu.dot_dimension_numbers<[1], [0], [0], [1], [0, 0, 1, 1], [], []>} : vector<8x64xf32>, vector<64x64xf32>, vector<8x64xf32> -> vector<8x64xf32>
    %184 = vector.extract_strided_slice %0 {offsets = [6, 0], sizes = [1, 64], strides = [1, 1]} : vector<10x128xf32> to vector<1x64xf32>
    %185 = vector.broadcast %184 : vector<1x64xf32> to vector<8x64xf32>
    %186 = arith.mulf %183, %185 : vector<8x64xf32>
    %187 = vector.extract_strided_slice %0 {offsets = [7, 0], sizes = [1, 64], strides = [1, 1]} : vector<10x128xf32> to vector<1x64xf32>
    %188 = vector.broadcast %187 : vector<1x64xf32> to vector<8x64xf32>
    %189 = arith.addf %186, %188 : vector<8x64xf32>
    %cst_70 = arith.constant 0.000000e+00 : f32
    %190 = vector.broadcast %cst_70 : f32 to vector<8x64xf32>
    %191 = arith.maximumf %189, %190 : vector<8x64xf32>
    %192 = vector.shape_cast %191 : vector<8x64xf32> to vector<1x8x64xf32>
    %c1_i32_71 = arith.constant 1 : i32
    %193 = tpu.dynamic_rotate %192 by %c1_i32_71 dim 1 : vector<1x8x64xf32>, i32 -> vector<1x8x64xf32>
    %c1_i32_72 = arith.constant 1 : i32
    %194 = vector.broadcast %c1_i32_72 : i32 to vector<1x8x64xi32>
    %195 = arith.cmpi sge, %2, %194 : vector<1x8x64xi32>
    %c9_i32_73 = arith.constant 9 : i32
    %196 = vector.broadcast %c9_i32_73 : i32 to vector<1x8x64xi32>
    %197 = arith.cmpi slt, %2, %196 : vector<1x8x64xi32>
    %198 = arith.andi %195, %197 : vector<1x8x64xi1>
    %cst_74 = arith.constant 0.000000e+00 : f32
    %199 = vector.broadcast %cst_74 : f32 to vector<1x8x64xf32>
    %200 = arith.select %198, %193, %199 : vector<1x8x64xi1>, vector<1x8x64xf32>
    %201 = vector.shape_cast %200 : vector<1x8x64xf32> to vector<8x64xf32>
    %202 = vector.shape_cast %192 : vector<1x8x64xf32> to vector<8x64xf32>
    %c7_i32_75 = arith.constant 7 : i32
    %203 = tpu.dynamic_rotate %192 by %c7_i32_75 dim 1 : vector<1x8x64xf32>, i32 -> vector<1x8x64xf32>
    %c-1_i32_76 = arith.constant -1 : i32
    %204 = vector.broadcast %c-1_i32_76 : i32 to vector<1x8x64xi32>
    %205 = arith.cmpi sge, %2, %204 : vector<1x8x64xi32>
    %c7_i32_77 = arith.constant 7 : i32
    %206 = vector.broadcast %c7_i32_77 : i32 to vector<1x8x64xi32>
    %207 = arith.cmpi slt, %2, %206 : vector<1x8x64xi32>
    %208 = arith.andi %205, %207 : vector<1x8x64xi1>
    %cst_78 = arith.constant 0.000000e+00 : f32
    %209 = vector.broadcast %cst_78 : f32 to vector<1x8x64xf32>
    %210 = arith.select %208, %203, %209 : vector<1x8x64xi1>, vector<1x8x64xf32>
    %211 = vector.shape_cast %210 : vector<1x8x64xf32> to vector<8x64xf32>
    %c0_79 = arith.constant 0 : index
    %c0_80 = arith.constant 0 : index
    %c0_81 = arith.constant 0 : index
    %212 = vector.load %arg5[%c0_79, %c0_80, %c0_81] : memref<3x64x128xf32, #tpu.memory_space<vmem>>, vector<1x64x128xf32>
    %213 = vector.shape_cast %212 : vector<1x64x128xf32> to vector<64x128xf32>
    %cst_82 = arith.constant dense<0.000000e+00> : vector<8x128xf32>
    %214 = tpu.matmul %201, %213, %cst_82 {dimension_numbers = #tpu.dot_dimension_numbers<[1], [0], [0], [1], [0, 0, 1, 1], [], []>} : vector<8x64xf32>, vector<64x128xf32>, vector<8x128xf32> -> vector<8x128xf32>
    %c1_83 = arith.constant 1 : index
    %c0_84 = arith.constant 0 : index
    %c0_85 = arith.constant 0 : index
    %215 = vector.load %arg5[%c1_83, %c0_84, %c0_85] : memref<3x64x128xf32, #tpu.memory_space<vmem>>, vector<1x64x128xf32>
    %216 = vector.shape_cast %215 : vector<1x64x128xf32> to vector<64x128xf32>
    %cst_86 = arith.constant dense<0.000000e+00> : vector<8x128xf32>
    %217 = tpu.matmul %202, %216, %cst_86 {dimension_numbers = #tpu.dot_dimension_numbers<[1], [0], [0], [1], [0, 0, 1, 1], [], []>} : vector<8x64xf32>, vector<64x128xf32>, vector<8x128xf32> -> vector<8x128xf32>
    %218 = arith.addf %214, %217 : vector<8x128xf32>
    %c2_87 = arith.constant 2 : index
    %c0_88 = arith.constant 0 : index
    %c0_89 = arith.constant 0 : index
    %219 = vector.load %arg5[%c2_87, %c0_88, %c0_89] : memref<3x64x128xf32, #tpu.memory_space<vmem>>, vector<1x64x128xf32>
    %220 = vector.shape_cast %219 : vector<1x64x128xf32> to vector<64x128xf32>
    %cst_90 = arith.constant dense<0.000000e+00> : vector<8x128xf32>
    %221 = tpu.matmul %211, %220, %cst_90 {dimension_numbers = #tpu.dot_dimension_numbers<[1], [0], [0], [1], [0, 0, 1, 1], [], []>} : vector<8x64xf32>, vector<64x128xf32>, vector<8x128xf32> -> vector<8x128xf32>
    %222 = arith.addf %218, %221 : vector<8x128xf32>
    %223 = vector.extract_strided_slice %0 {offsets = [8, 0], sizes = [1, 128], strides = [1, 1]} : vector<10x128xf32> to vector<1x128xf32>
    %224 = vector.broadcast %223 : vector<1x128xf32> to vector<8x128xf32>
    %225 = arith.mulf %222, %224 : vector<8x128xf32>
    %226 = vector.extract_strided_slice %0 {offsets = [9, 0], sizes = [1, 128], strides = [1, 1]} : vector<10x128xf32> to vector<1x128xf32>
    %227 = vector.broadcast %226 : vector<1x128xf32> to vector<8x128xf32>
    %228 = arith.addf %225, %227 : vector<8x128xf32>
    %229 = vector.shape_cast %228 : vector<8x128xf32> to vector<1x8x128xf32>
    %c0_91 = arith.constant 0 : index
    %c0_92 = arith.constant 0 : index
    %c0_93 = arith.constant 0 : index
    %230 = vector.load %arg6[%c0_91, %c0_92, %c0_93] : memref<1x8x128xf32, #tpu.memory_space<vmem>>, vector<1x8x128xf32>
    tpu.vector_store %arg6[%c0_91, %c0_92, %c0_93], %229 {strides = array<i32>} : memref<1x8x128xf32, #tpu.memory_space<vmem>>, vector<1x8x128xf32>,
    return
  }
  func.func @transform_0(%arg0: i32) -> (i32, i32, i32, i32) {
    %c0_i32 = arith.constant 0 : i32
    %c0_i32_0 = arith.constant 0 : i32
    %c0_i32_1 = arith.constant 0 : i32
    %c0_i32_2 = arith.constant 0 : i32
    return %arg0, %c0_i32, %c0_i32_0, %c0_i32_1 : i32, i32, i32, i32
  }
  func.func @transform_1(%arg0: i32) -> (i32, i32) {
    %c0_i32 = arith.constant 0 : i32
    %c0_i32_0 = arith.constant 0 : i32
    %c0_i32_1 = arith.constant 0 : i32
    return %c0_i32, %c0_i32_0 : i32, i32
  }
  func.func @transform_2(%arg0: i32) -> (i32, i32) {
    %c0_i32 = arith.constant 0 : i32
    %c0_i32_0 = arith.constant 0 : i32
    %c0_i32_1 = arith.constant 0 : i32
    return %c0_i32, %c0_i32_0 : i32, i32
  }
  func.func @transform_3(%arg0: i32) -> (i32, i32) {
    %c0_i32 = arith.constant 0 : i32
    %c0_i32_0 = arith.constant 0 : i32
    %c0_i32_1 = arith.constant 0 : i32
    return %c0_i32, %c0_i32_0 : i32, i32
  }
  func.func @transform_4(%arg0: i32) -> (i32, i32, i32) {
    %c0_i32 = arith.constant 0 : i32
    %c0_i32_0 = arith.constant 0 : i32
    %c0_i32_1 = arith.constant 0 : i32
    %c0_i32_2 = arith.constant 0 : i32
    return %c0_i32, %c0_i32_0, %c0_i32_1 : i32, i32, i32
  }
  func.func @transform_5(%arg0: i32) -> (i32, i32, i32) {
    %c0_i32 = arith.constant 0 : i32
    %c0_i32_0 = arith.constant 0 : i32
    %c0_i32_1 = arith.constant 0 : i32
    return %arg0, %c0_i32, %c0_i32_0 : i32, i32, i32
  }
}

</mosaic_0001>

<bundles_post_ra>
// kernel: tpu_custom_call.1
= control target key start
LH: loop header
LB: loop body
LE: loop exit
PB: predicated region body
PF: predicated region fallthrough
CT: control target
= control target key end

     0   :  { %10 = vsyncpa [#allocation3], 0  ;;  %s1757_s0 = inlined_call_operand.vmem [shape: f32[2,4,9,72], index: 0, kind: input, shape index: {}]   ;;  %s1758_s1 = inlined_call_operand.vmem [shape: f32[9,64], index: 1, kind: input, shape index: {}]   ;;  %s1759_s2 = inlined_call_operand.hbm [shape: f32[10,128], index: 2, kind: input, shape index: {}]   ;;  %s1760_s3 = inlined_call_operand.hbm [shape: f32[64,64], index: 3, kind: input, shape index: {}]   ;;  %s1761_s4 = inlined_call_operand.vmem [shape: f32[3,64,128], index: 4, kind: input, shape index: {}]   ;;  %s1762_s5 = inlined_call_operand.hbm [shape: f32[2,8,128], index: 5, kind: output, shape index: {}]  }
   0x1   :  { %11 = vsyncpa [#allocation6], 0 }
   0x2   :  { %12 = vsyncpa [#allocation4], 0 }
   0x3   :  { %14 = vsyncpa [#allocation4 + $0x1], 0  ;;  %s1357_s18 = smov 0   ;;  %s1359_s19 = smov 0  }
   0x4   :  { %s1361_s20 = smov 0   ;;  %s1363_s21 = smov 0  }
   0x5 LB: > { %s1378_s22 = sadd.s32 4294967295, %s1313_s21   ;;  %s912_s23 = sadd.s32 4294967294, %s1313_s21   ;;  %s1313_s21 = sphi %s1363_s21, %s1780_s21   ;;  %s1309_s20 = sphi %s1361_s20, %s1779_s20   ;;  %s1305_s19 = sphi %s1359_s19, %s1778_s19   ;;  %s1301_s18 = sphi %s1357_s18, %s1777_s18  }
   0x6   : > { %s1382_s24 = sadd.s32 1, %s1313_s21   ;;  %s137_s25 = sadd.s32 1, %s1309_s20 }
   0x7   : > { %s134_s26 = ssub.s32 %s1313_s21, %s1382_s24  ;;  %p147_p0 = scmp.ne.s32.totalorder %s1309_s20, %s1305_s19 }
   0x8   : > { %p135_p1 = scmp.eq.s32.totalorder %s134_s26, 0  ;;  %p148_p2 = scmp.eq.s32.totalorder %s1378_s22, 1 }
   0x9   : > { %p153_p3 = scmp.ne.s32.totalorder %s1305_s19, %s1301_s18  ;;  %p154_p4 = scmp.eq.s32.totalorder %s912_s23, 1 }
   0xa   : > { %s1393_s27 = scalar_select %p135_p1, %s1309_s20, %s137_s25  }
   0xb   : > { %p1395_p5 = por %p148_p2, %p147_p0  ;;  %p1399_p6 = por %p154_p4, %p153_p3 }
   0xc   : > { %p913_p7 = scmp.ge.s32.totalorder %s1313_s21, 1  ;;  %p161_p8 = scmp.lt.s32.totalorder %s1313_s21, 3 }
   0xd   : > { %s1766_s28 = scalar_select %p1395_p5, 1, 0 }
   0xe   : > { %s1767_s29 = scalar_select %p1399_p6, 1, 0 }
   0xf   : > { %p1763_p9 = scmp.eq.s32.totalorder %s1378_s22, 0  ;;  %p1406_p10 = pnand %p913_p7, %p161_p8 }
  0x10   : > { %s1315_s6 = smov [#allocation2]   ;;  %s1316_s9 = smov [#allocation5]  }
  0x11   : > { %s1768_s30 = scalar_select %p1406_p10, 1, 0 }
  0x12   : > { %s176_s7 = sshll.u32 %s1315_s6, 4  ;;  %p1126_p11 = pneg %p1406_p10  ;;  %s177_s7 = int_to_ptr.vmem [resolvable:$true] %s176_s7 }
  0x13   : > { %s189_s10 = sshll.u32 %s1316_s9, 4  ;;  %s1187_s13 = scalar_lea.hbm %s1759_s2, 256  ;;  %s1418_s10 = int_to_ptr.vmem [resolvable:$true] %s189_s10 }
  0x14   : > { %p1414_p12 = pnand %p1763_p9, %p1126_p11  ;;  %p1188_p13 = scmp.ne.s32.totalorder %s1759_s2, %s1187_s13 }
  0x15   : > { %p1194_p3 = scmp.lt.u32.totalorder %s1187_s13, %s1759_s2 }
  0x16   : > { %p1189_p0 = pneg %p1414_p12 }
  0x18   : > { %p1190_p1 = pnand %p1189_p0, %p1188_p13 }
  0x1a   : > { %p1191_p2 = pneg %p1190_p1 }
  0x1c   : > { %p1196_p4 = pnand %p1194_p3, %p1191_p2 }
  0x1e   : > { %1199 = shalt.err (!%p1196_p4)
}
  0x1f   : > { %s1200_s23 = scalar_lea.vmem %s177_s7, 256  ;;  %p1208_p9 = scmp.lt.s32.totalorder %s177_s7, %s177_s7 }
  0x20   : > { %p1201_p7 = scmp.ne.s32.totalorder %s177_s7, %s1200_s23  ;;  %p1209_p6 = scmp.lt.s32.totalorder %s1200_s23, %s1200_s23 }
  0x22   : > { %p1203_p8 = pnand %p1201_p7, %p1189_p0  ;;  %p1210_p5 = por %p1209_p6, %p1208_p9 }
  0x24   : > { %p1204_p11 = pneg %p1203_p8 }
  0x26   : > { %p1211_p10 = pnand %p1210_p5, %p1204_p11 }
  0x28   : > { %1214 = shalt.err (!%p1211_p10)
}
  0x29   : > { %s1317_s25 = smov 128   ;;  %s1318_s26 = smov 8  }
  0x2a   : > { %1129 = dma.hbm_to_vmem [thread:$0]  (!%p1414_p12), %s1759_s2, 256, %s177_s7, [#allocation3], %s1317_s25, %s1317_s25, %s1318_s26  }
  0x2b   : > { %s1215_s13 = scalar_lea.hbm %s1760_s3, 1024 }
  0x2c   : > { %p1216_p13 = scmp.ne.s32.totalorder %s1760_s3, %s1215_s13  ;;  %p1222_p9 = scmp.lt.u32.totalorder %s1215_s13, %s1760_s3 }
  0x2e   : > { %p1218_p5 = pnand %p1216_p13, %p1189_p0 }
  0x30   : > { %p1219_p6 = pneg %p1218_p5 }
  0x32   : > { %p1224_p10 = pnand %p1222_p9, %p1219_p6 }
  0x34   : > { %1227 = shalt.err (!%p1224_p10)
}
  0x35   : > { %s1228_s7 = scalar_lea.vmem %s1418_s10, 1024  ;;  %p1236_p4 = scmp.lt.s32.totalorder %s1418_s10, %s1418_s10 }
  0x36   : > { %p1229_p1 = scmp.ne.s32.totalorder %s1418_s10, %s1228_s7  ;;  %p1237_p7 = scmp.lt.s32.totalorder %s1228_s7, %s1228_s7 }
  0x38   : > { %p1231_p2 = pnand %p1229_p1, %p1189_p0  ;;  %p1238_p8 = por %p1237_p7, %p1236_p4 }
  0x3a   : > { %p1232_p3 = pneg %p1231_p2 }
  0x3c   : > { %p1239_p11 = pnand %p1238_p8, %p1232_p3 }
  0x3e   : > { %1242 = shalt.err (!%p1239_p11)
}
  0x3f   : > { %1132 = dma.hbm_to_vmem [thread:$0]  (!%p1414_p12), %s1760_s3, 1024, %s1418_s10, [#allocation6], %s1317_s25, %s1317_s25, %s1318_s26  }
  0x40   : > { %p1770_p13 = scmp.ne.s32.totalorder %s1768_s30, 0 }
  0x41   : > { %p1771_p5 = scmp.eq.s32.totalorder (!%p1770_p13), %s1378_s22, 0 }
  0x42   : > { %216 = sbr.rel (%p1770_p13) target bundleno = 1307 (0x51b), region = 40 }
  0x49   : > { %1288 = dma.done.wait (%p1771_p5), [#allocation3], 256   ;;  %p1772_p0 = pmov %p1771_p5 }
  0x4b   : > { %1290 = vsyncadd (%p1772_p0), [#allocation3], 4294967040  ;;  %p1773_p6 = pmov %p1772_p0 }
  0x4c   : > { %p1774_p9 = pmov %p1772_p0 }
  0x4d   : > { %1292 = dma.done.wait (%p1773_p6), [#allocation6], 1024  }
  0x4e   : > { %1294 = vsyncadd (%p1774_p9), [#allocation6], 4294966272  ;;  %p248_p10 = scmp.lt.s32.totalorder %s1378_s22, 1  ;;  %v257_v0 = vlaneseq  ;;  %s1319_s9 = smov 72   ;;  %v255_v6 = vld [vmem:[%s1758_s1] sm:$0xff]  ;;  %vm276_vm0 = vcmask 1048128  }
  0x4f   : > { %s1320_s13 = smov 8   ;;  %v927_v10 = vld [vmem:[%s1758_s1 + $0x8] ss:$0 sm:$0xff]  ;;  %s1321_s16 = smov 120   ;;  %v1546_v57 = vld [vmem:[#allocation2] sm:$0xff]  ;;  %vm391_vm3 = vcmask 1048064  }
  0x50   : > { %s249_s8 = scalar_select %p248_p10, %s1378_s22, 1  ;;  %v1480_v1 = vshrl.u32 %v257_v0, 7  ;;  %vm1324_vm4 = vmmov 0   ;;  %vm471_vm9 = vcmask 523264  }
  0x51   : > { %s1322_s17 = smov 64   ;;  %s245_s7 = sand.u32 1, %s1305_s19  }
  0x52   : > { %s952_s10 = sshll.u32 %s249_s8, 6  ;;  %v285_v4 = vsub.s32 2, %v1480_v1  ;;  %v321_v8 = vsub.s32 5, %v1480_v1  ;;  %v1523_v29 = vsub.s32 0, %v1480_v1  ;;  %v1526_v30 = vsub.s32 1, %v1480_v1  ;;  %s920_s23 = sshll.u32 %s245_s7, 3 }
  0x53   : > { %s1485_s26 = scalar_lea.vmem %s1757_s0, %s952_s10  ;;  %v301_v34 = vsub.s32 3, %v1480_v1  ;;  %v309_v37 = vsub.s32 4, %v1480_v1  ;;  %v336_v41 = vsub.s32 6, %v1480_v1  ;;  %v343_v44 = vsub.s32 7, %v1480_v1  ;;  %s949_s6 = sshll.u32 %s1378_s22, 7 }
  0x54   : > { %v261_v2 = vld [vmem:[%s1485_s26] sm:$0xff]  ;;  %v286_v7 = vrot.slane %v255_v6, %v285_v4  ;;  %v322_v9 = vrot.slane %v255_v6, %v321_v8  ;;  %v265_v31 = vrot.slane %v255_v6, %v1523_v29  ;;  %v273_v32 = vrot.slane %v255_v6, %v1526_v30  ;;  %v923_v33 = vld [vmem:[%s1485_s26 + $0x10] sm:$0xff]  ;;  %s247_s8 = scalar_lea.vmem [#allocation7], %s920_s23  ;;  %p1775_p1 = scmp.ne.s32.totalorder %s1766_s28, 0 }
  0x55   : > { %v1489_v3 = vld [vmem:[%s1485_s26 + $0x1] sm:$0xff]  ;;  %277 = vrot.lane.b32.xlu0 %v261_v2, %s1319_s9  ;;  %v302_v38 = vrot.slane %v255_v6, %v301_v34  ;;  %v310_v40 = vrot.slane %v255_v6, %v309_v37  ;;  %v925_v42 = vld [vmem:[%s1485_s26 + $0x30] sm:$0xff]  ;;  %v337_v48 = vrot.slane %v255_v6, %v336_v41  ;;  %v344_v50 = vrot.slane %v255_v6, %v343_v44  ;;  %s831_s10 = sshll.u32 %s247_s8, 4  ;;  %s1326_s22 = smov [#allocation7]   ;;  %s1717_s10 = int_to_ptr.vmem [resolvable:$true] %s831_s10 }
  0x56   : > { %347 = vrot.lane.b32.xlu1 %v1489_v3, %s1319_s9  ;;  %v924_v5 = vld [vmem:[%s1485_s26 + $0x20] sm:$0xff]  ;;  %v266_v35 = vmul.f32 %v265_v31, %v261_v2  ;;  %v274_v36 = vmul.f32 %v923_v33, %v273_v32  ;;  %v926_v52 = vld [vmem:[%s1485_s26 + $0x11] sm:$0xff]  ;;  %v370_v61 = vrot.slane %v1546_v57, %v1523_v29  ;;  %v375_v63 = vrot.slane %v1546_v57, %v1526_v30  ;;  %s1715_s26 = scalar_lea.hbm %s1762_s5, %s949_s6  ;;  %s1243_s11 = scalar_lea.vmem %s1717_s10, 128 }
  0x57   : > { %v303_v43 = vmul.f32 %v924_v5, %v302_v38  ;;  %v311_v47 = vmul.f32 %v925_v42, %v310_v40  ;;  %v338_v53 = vmul.f32 %v337_v48, %v1489_v3  ;;  %v345_v56 = vmul.f32 %v926_v52, %v344_v50  ;;  %v467_v32 = vld [vmem:[#allocation5 + $0x20] sm:$0xff]  ;;  %v468_v33 = vld [vmem:[#allocation5 + $0x28] sm:$0xff]  ;;  %v470_v38 = vld [vmem:[#allocation5 + $0x38] sm:$0xff]  ;;  %p1244_p12 = scmp.ne.s32.totalorder %s1717_s10, %s1243_s11  ;;  %s1247_s12 = sshll.u32 %s1326_s22, 4  ;;  %s1248_s12 = int_to_ptr.vmem [resolvable:$false] %s1247_s12 }
  0x58   : > { %v275_v39 = vadd.f32 %v274_v36, %v266_v35  ;;  %vm379_vm1 = vcmp.ge.s32.totalorder %v1480_v1, 1  ;;  %vm387_vm2 = vcmp.lt.s32.totalorder %v1480_v1, 7  ;;  %v1072_v35 = vpack.c.bf16 %v468_v33, %v467_v32  ;;  %v469_v36 = vld [vmem:[#allocation5 + $0x30] sm:$0xff]  ;;  %v561_v42 = vld [vmem:[%s1761_s4 + $0x8] sm:$0xff]  ;;  %p1250_p4 = scmp.lt.s32.totalorder %s1717_s10, %s1248_s12 }
  0x59   : > { %313 = vrot.lane.b32.xlu0 %v924_v5, %s1319_s9  ;;  %v560_v40 = vld [vmem:[%s1761_s4] sm:$0xff]  ;;  %v260_v48 = vand.u32 127, %v257_v0  ;;  %v440_v0 = vrot.slane %v1546_v57, %v301_v34  ;;  %v455_v34 = vrot.slane %v1546_v57, %v309_v37  ;;  %v565_v32 = vld [vmem:[%s1761_s4 + $0x28] sm:$0xff]  ;;  %p1245_p2 = pnand %p1244_p12, %p1775_p1 }
  0x5b   : > { %vm398_vm5 = vcmp.ge.s32.totalorder %v260_v48, 8  ;;  %vm404_vm6 = vcmp.lt.s32.totalorder %v260_v48, 56  ;;  %p1246_p3 = pneg %p1245_p2 }
  0x5d   : > { %288 = vrot.lane.b32.xlu0 %v286_v7, %s1320_s13 }
  0x61   : > { %324 = vrot.lane.b32.xlu0 %v322_v9, %s1320_s13 }
  0x65   : > { %358 = vrot.lane.b32.xlu0 %v927_v10, %s1320_s13  ;;  %s1249_s13 = scalar_lea.vmem %s1248_s12, 256 }
  0x66   : > { %p1251_p7 = scmp.lt.s32.totalorder %s1249_s13, %s1243_s11 }
  0x68   : > { %p1252_p8 = por %p1251_p7, %p1250_p4 }
  0x6a   : > { %p1253_p11 = pnand %p1252_p8, %p1246_p3 }
  0xc7   : > { %v278_v11 = vpop.permute.xlu0 %277 }
  0xc8   : > { %v279_v12 = vsel %vm276_vm0, %v278_v11, %v261_v2  ;;  %v348_v14 = vpop.permute.xlu1 %347 }
  0xc9   : > { %280 = vrot.lane.b32.xlu1 %v279_v12, %s1319_s9  ;;  %v349_v16 = vsel %vm276_vm0, %v348_v14, %v1489_v3 }
  0xcb   : > { %v314_v13 = vpop.permute.xlu0 %313 }
  0xcc   : > { %v315_v15 = vsel %vm276_vm0, %v314_v13, %v924_v5 }
  0xcd   : > { %316 = vrot.lane.b32.xlu1 %v315_v15, %s1319_s9 }
  0xcf   : > { %v289_v17 = vpop.permute.xlu0 %288 }
  0xd1   : > { %350 = vrot.lane.b32.xlu1 %v349_v16, %s1319_s9 }
  0xd3   : > { %v325_v21 = vpop.permute.xlu0 %324 }
  0xd7   : > { %v359_v25 = vpop.permute.xlu0 %358 }
 0x13b   : > { %v281_v18 = vpop.permute.xlu1 %280 }
 0x13c   : > { %v282_v19 = vsel %vm276_vm0, %v281_v18, %v261_v2 }
 0x13d   : > { %v291_v20 = vmul.f32 %v289_v17, %v282_v19 }
 0x13f   : > { %293 = vrot.lane.b32.xlu1 %v291_v20, %s1321_s16  ;;  %v317_v22 = vpop.permute.xlu1 %316  ;;  %v463_v20 = vld [vmem:[#allocation5] sm:$0xff] }
 0x140   : > { %v318_v23 = vsel %vm276_vm0, %v317_v22, %v924_v5  ;;  %v465_v22 = vld [vmem:[#allocation5 + $0x10] sm:$0xff] }
 0x141   : > { %v327_v24 = vmul.f32 %v325_v21, %v318_v23  ;;  %v464_v21 = vld [vmem:[#allocation5 + $0x8] sm:$0xff]  ;;  %v1323_v23 = vmov 0.0|0.0  }
 0x142   : > { %1065 = vmatprep.subr.bf16.mxu0 %v1323_v23  ;;  %1089 = vmatprep.subr.bf16.mxu1 %v1323_v23 }
 0x143   : > { %329 = vrot.lane.b32.xlu0 %v327_v24, %s1321_s16  ;;  %v351_v26 = vpop.permute.xlu1 %350  ;;  %v1066_v24 = vpack.c.bf16 %v464_v21, %v463_v20  ;;  %v930_v20 = vld [vmem:[%s1761_s4 + $0x48] sm:$0xff] }
 0x144   : > { %v352_v27 = vsel %vm276_vm0, %v351_v26, %v1489_v3  ;;  %v1325_v26 = vmov 0.0  }
 0x145   : > { %v361_v28 = vmul.f32 %v359_v25, %v352_v27  ;;  %v466_v25 = vld [vmem:[#allocation5 + $0x18] sm:$0xff]  ;;  %1005 = vmatprep.mubr.msk.f32.mxu0 %vm1324_vm4, %v1325_v26  ;;  %1043 = vmatprep.mubr.msk.f32.mxu1 %vm1324_vm4, %v1325_v26 }
 0x146   : > { %1067 = vmatpush3.bf16.msra.mxu0 %v1066_v24  ;;  %v1069_v31 = vpack.c.bf16 %v466_v25, %v465_v22  ;;  %v931_v24 = vld [vmem:[%s1761_s4 + $0x50] sm:$0xff] }
 0x147   : > { %363 = vrot.lane.b32.xlu1 %v361_v28, %s1321_s16  ;;  %1068 = vmatprep.subr.bf16.mxu0 %v1323_v23 }
 0x14a   : > { %1070 = vmatpush3.bf16.msra.mxu0 %v1069_v31  ;;  %v564_v31 = vld [vmem:[%s1761_s4 + $0x20] sm:$0xff] }
 0x14b   : > { %1071 = vmatprep.subr.bf16.mxu0 %v1323_v23  ;;  %v1096_v33 = vpack.c.bf16 %v565_v32, %v564_v31 }
 0x14e   : > { %1073 = vmatpush3.bf16.msra.mxu0 %v1072_v35  ;;  %v935_v35 = vld [vmem:[%s1761_s4 + $0x70] sm:$0xff] }
 0x14f   : > { %1074 = vmatprep.subr.bf16.mxu0 %v1323_v23 }
 0x1b1   : > { %v294_v45 = vpop.permute.xlu1 %293 }
 0x1b2   : > { %v296_v46 = vadd.f32 %v294_v45, %v275_v39  ;;  %v1075_v39 = vpack.c.bf16 %v470_v38, %v469_v36  ;;  %v562_v45 = vld [vmem:[%s1761_s4 + $0x10] sm:$0xff]  ;;  %v936_v36 = vld [vmem:[%s1761_s4 + $0x78] sm:$0xff] }
 0x1b3   : > { %v1087_v38 = vpack.c.bf16 %v936_v36, %v935_v35 }
 0x1b4   : > { %v304_v49 = vadd.f32 %v303_v43, %v296_v46  ;;  %1076 = vmatpush3.bf16.msra.mxu0 %v1075_v39  ;;  %v1090_v43 = vpack.c.bf16 %v561_v42, %v560_v40  ;;  %v563_v46 = vld [vmem:[%s1761_s4 + $0x18] sm:$0xff]  ;;  %v566_v39 = vld [vmem:[%s1761_s4 + $0x30] sm:$0xff] }
 0x1b5   : > { %v330_v51 = vpop.permute.xlu0 %329  ;;  %1077 = vmatprep.subr.bf16.mxu0 %v1323_v23  ;;  %v567_v40 = vld [vmem:[%s1761_s4 + $0x38] sm:$0xff] }
 0x1b6   : > { %v312_v54 = vadd.f32 %v311_v47, %v304_v49  ;;  %1091 = vmatpush3.bf16.msra.mxu1 %v1090_v43  ;;  %v1093_v47 = vpack.c.bf16 %v563_v46, %v562_v45  ;;  %v1099_v42 = vpack.c.bf16 %v567_v40, %v566_v39  ;;  %v548_v43 = vrot.slane %v1546_v57, %v336_v41 }
 0x1b7   : > { %1092 = vmatprep.subr.bf16.mxu1 %v1323_v23  ;;  %v553_v45 = vrot.slane %v1546_v57, %v343_v44  ;;  %v941_v44 = vld [vmem:[%s1761_s4 + $0x90] sm:$0xff] }
 0x1b8   : > { %v332_v55 = vadd.f32 %v330_v51, %v312_v54 }
 0x1b9   : > { %v364_v59 = vpop.permute.xlu1 %363 }
 0x1ba   : > { %v339_v58 = vadd.f32 %v338_v53, %v332_v55  ;;  %1094 = vmatpush3.bf16.msra.mxu1 %v1093_v47 }
 0x1bb   : > { %1095 = vmatprep.subr.bf16.mxu1 %v1323_v23 }
 0x1bc   : > { %v346_v60 = vadd.f32 %v345_v56, %v339_v58 }
 0x1be   : > { %v366_v62 = vadd.f32 %v364_v59, %v346_v60  ;;  %v413_v59 = vrot.slane %v1546_v57, %v285_v4  ;;  %1097 = vmatpush3.bf16.msra.mxu1 %v1096_v33 }
 0x1bf   : > { %1098 = vmatprep.subr.bf16.mxu1 %v1323_v23 }
 0x1c0   : > { %v371_v2 = vmul.f32 %v370_v61, %v366_v62 }
 0x1c2   : > { %v376_v5 = vadd.f32 %v375_v63, %v371_v2  ;;  %1100 = vmatpush3.bf16.msra.mxu1 %v1099_v42 }
 0x1c3   : > { %1101 = vmatprep.subr.bf16.mxu1 %v1323_v23 }
 0x1c4   : > { %v1552_v6 = vmax.f32 %v376_v5, 0.0 }
 0x1c6   : > { %415 = vrot.lane.b32.xlu0 %v1552_v6, %s1322_s17  ;;  %v378_v3 = vrot.slane %v1552_v6, 7  ;;  %v1558_v7 = vmul.f32 2.0, %v1552_v6  ;;  %v385_v9 = vrot.slane %v1552_v6, 1 }
 0x1c8   : > { %v382_v10 = vsel %vm379_vm1, %v378_v3, 0.0  ;;  %v389_v12 = vsel %vm387_vm2, %v385_v9, 0.0 }
 0x1c9   : > { %v384_v11 = vadd.f32 %v1558_v7, %v382_v10 }
 0x1cb   : > { %v390_v13 = vadd.f32 %v389_v12, %v384_v11 }
 0x1cd   : > { %392 = vrot.lane.b32.xlu1 %v390_v13, %s1322_s17 }
 0x238   : > { %v416_v14 = vpop.permute.xlu0 %415 }
 0x239   : > { %v417_v15 = vsel %vm391_vm3, %v416_v14, %v1552_v6 }
 0x23a   : > { %418 = vrot.lane.b32.xlu0 %v417_v15, %s1322_s17 }
 0x23f   : > { %v393_v16 = vpop.permute.xlu1 %392 }
 0x240   : > { %v394_v17 = vsel %vm391_vm3, %v393_v16, %v390_v13 }
 0x241   : > { %395 = vrot.lane.b32.xlu1 %v394_v17, %s1322_s17  ;;  %v461_v17 = vrot.slane %v1546_v57, %v321_v8  ;;  %v932_v8 = vld [vmem:[%s1761_s4 + $0x58] sm:$0xff] }
 0x242   : > { %v1081_v25 = vpack.c.bf16 %v932_v8, %v931_v24  ;;  %v942_v57 = vld [vmem:[%s1761_s4 + $0x98] sm:$0xff] }
 0x2ac   : > { %v419_v18 = vpop.permute.xlu0 %418 }
 0x2ad   : > { %v420_v19 = vsel %vm391_vm3, %v419_v18, %v1552_v6 }
 0x2ae   : > { %422 = vrot.lane.b32.xlu0 %v420_v19, %s1319_s9  ;;  %427 = vrot.lane.b32.xlu1 %v420_v19, %s1321_s16  ;;  %v929_v19 = vld [vmem:[%s1761_s4 + $0x40] sm:$0xff] }
 0x2af   : > { %v1078_v21 = vpack.c.bf16 %v930_v20, %v929_v19 }
 0x2b3   : > { %v396_v27 = vpop.permute.xlu1 %395 }
 0x2b4   : > { %v397_v28 = vsel %vm391_vm3, %v396_v27, %v390_v13  ;;  %v934_v27 = vld [vmem:[%s1761_s4 + $0x68] sm:$0xff] }
 0x2b5   : > { %405 = vrot.lane.b32.xlu1 %v397_v28, %s1321_s16  ;;  %400 = vrot.lane.b32.xlu0 %v397_v28, %s1319_s9  ;;  %s818_s9 = scalar_lea.sflag [#allocation4], %s245_s7 }
 0x320   : > { %v423_v49 = vpop.permute.xlu0 %422  ;;  %v428_v50 = vpop.permute.xlu1 %427 }
 0x321   : > { %v425_v51 = vsel %vm398_vm5, %v423_v49, 0.0  ;;  %v430_v53 = vsel %vm404_vm6, %v428_v50, 0.0  ;;  %v939_v50 = vld [vmem:[%s1761_s4 + $0x80] sm:$0xff] }
 0x322   : > { %v426_v52 = vadd.f32 %v425_v51, %v1558_v7  ;;  %v940_v51 = vld [vmem:[%s1761_s4 + $0x88] sm:$0xff] }
 0x324   : > { %v431_v54 = vadd.f32 %v430_v53, %v426_v52  ;;  %v1102_v53 = vpack.c.bf16 %v940_v51, %v939_v50 }
 0x326   : > { %v432_v55 = vrot.slane %v431_v54, 7  ;;  %v434_v56 = vrot.slane %v431_v54, 1 }
 0x327   : > { %v401_v58 = vpop.permute.xlu0 %400  ;;  %v406_v60 = vpop.permute.xlu1 %405 }
 0x328   : > { %v433_v61 = vsel %vm379_vm1, %v432_v55, 0.0  ;;  %v435_v62 = vsel %vm387_vm2, %v434_v56, 0.0  ;;  %v403_v63 = vsel %vm398_vm5, %v401_v58, 0.0  ;;  %v408_v2 = vsel %vm404_vm6, %v406_v60, 0.0  ;;  %v943_v56 = vld [vmem:[%s1761_s4 + $0xa0] sm:$0xff]  ;;  %v944_v58 = vld [vmem:[%s1761_s4 + $0xa8] sm:$0xff] }
 0x329   : > { %v436_v5 = vsub.f32 %v433_v61, %v435_v62  ;;  %v409_v3 = vsub.f32 %v403_v63, %v408_v2  ;;  %v1105_v55 = vpack.c.bf16 %v942_v57, %v941_v44 }
 0x32b   : > { %v441_v7 = vadd.f32 %v440_v0, %v436_v5  ;;  %v414_v9 = vadd.f32 %v413_v59, %v409_v3  ;;  %v1108_v59 = vpack.c.bf16 %v944_v58, %v943_v56  ;;  %v945_v0 = vld [vmem:[%s1761_s4 + $0xb0] sm:$0xff]  ;;  %v254_v5 = vld [vmem:[#allocation2 + $0x8] sm:$0x3] }
 0x32c   : > { %v809_v3 = vrot.slane %v254_v5, %v1523_v29 }
 0x32d   : > { %v443_v10 = vmul.f32 %v441_v7, %v441_v7  ;;  %v442_v4 = vmul.f32 %v414_v9, %v414_v9 }
 0x32f   : > { %v444_v11 = vadd.f32 %v443_v10, %v442_v4  ;;  %v814_v10 = vrot.slane %v254_v5, %v1526_v30 }
 0x331   : > { %1185 = vrsqrt.f32 %v444_v11  ;;  %vm447_vm7 = vcmp.eq.f32.partialorder %v444_v11, inf  ;;  %v450_v14 = vand.u32 2147483648, %v444_v11  ;;  %vm449_vm8 = vcmp.eq.f32.partialorder %v444_v11, 0.0 }
 0x33b   : > { %v1186_v12 = vpop.eup %1185 }
 0x33c   : > { %v446_v13 = vmul.f32 %v1186_v12, %v444_v11 }
 0x33e   : > { %v448_v15 = vsel %vm447_vm7, %v444_v11, %v446_v13 }
 0x33f   : > { %v451_v16 = vsel %vm449_vm8, %v450_v14, %v448_v15 }
 0x340   : > { %v456_v18 = vmul.f32 %v455_v34, %v451_v16 }
 0x342   : > { %v457_v37 = vadd.f32 %v456_v18, %v1552_v6  ;;  %v933_v6 = vld [vmem:[%s1761_s4 + $0x60] sm:$0xff] }
 0x343   : > { %v1084_v28 = vpack.c.bf16 %v934_v27, %v933_v6 }
 0x344   : > { %v462_v22 = vadd.f32 %v461_v17, %v457_v37 }
 0x346   : > { %1006 = vmatmul.mubr.msk.f32.vlgmr.msra.gmra.mrb[0].mxu0 %vm471_vm9, %v462_v22 }
 0x347   : > { %1079 = vmatpush3.bf16.msra.mxu0 %v1078_v21  ;;  %1024 = vmatprep.mubr.msk.f32.mxu0 %vm1324_vm4, %v1325_v26 }
 0x348   : > { %1080 = vmatprep.subr.bf16.mxu0 %v1323_v23 }
 0x34b   : > { %1082 = vmatpush3.bf16.msra.mxu0 %v1081_v25 }
 0x34c   : > { %1083 = vmatprep.subr.bf16.mxu0 %v1323_v23 }
 0x34f   : > { %1085 = vmatpush3.bf16.msra.mxu0 %v1084_v28 }
 0x350   : > { %1086 = vmatprep.subr.bf16.mxu0 %v1323_v23 }
 0x353   : > { %1088 = vmatpush3.bf16.msra.mxu0 %v1087_v38 }
 0x419   : > { %v541_v46 = vpop.f32.mrb[0].mxu0 }
 0x41a   : > { %v549_v47 = vmul.f32 %v548_v43, %v541_v46  ;;  %v1007_v48 = vpop.f32.mrb[1].mxu0 }
 0x41c   : > { %v554_v49 = vadd.f32 %v553_v45, %v549_v47 }
 0x41e   : > { %v555_v52 = vmax.f32 %v554_v49, 0.0 }
 0x420   : > { %1025 = vmatmul.mubr.msk.f32.vlgmr.msra.gmra.mrb[2].mxu0 %vm471_vm9, %v555_v52  ;;  %v556_v41 = vrot.slane %v555_v52, 7  ;;  %v558_v61 = vrot.slane %v555_v52, 1 }
 0x422   : > { %v557_v54 = vsel %vm379_vm1, %v556_v41, 0.0  ;;  %v559_v62 = vsel %vm387_vm2, %v558_v61, 0.0 }
 0x423   : > { %1044 = vmatmul.mubr.msk.f32.vlgmr.msra.gmra.mrb[0].mxu1 %vm471_vm9, %v557_v54 }
 0x424   : > { %1103 = vmatpush3.bf16.msra.mxu1 %v1102_v53  ;;  %1062 = vmatprep.mubr.msk.f32.mxu1 %vm1324_vm4, %v1325_v26  ;;  %v946_v26 = vld [vmem:[%s1761_s4 + $0xb8] sm:$0xff] }
 0x425   : > { %1104 = vmatprep.subr.bf16.mxu1 %v1323_v23  ;;  %v1111_v60 = vpack.c.bf16 %v946_v26, %v945_v0 }
 0x428   : > { %1106 = vmatpush3.bf16.msra.mxu1 %v1105_v55 }
 0x429   : > { %1107 = vmatprep.subr.bf16.mxu1 %v1323_v23 }
 0x42c   : > { %1109 = vmatpush3.bf16.msra.mxu1 %v1108_v59 }
 0x42d   : > { %1110 = vmatprep.subr.bf16.mxu1 %v1323_v23 }
 0x430   : > { %1112 = vmatpush3.bf16.msra.mxu1 %v1111_v60 }
 0x433   : > { %1063 = vmatmul.mubr.msk.f32.vlgmr.msra.gmra.mrb[0].mxu1 %vm471_vm9, %v559_v62 }
 0x4f3   : > { %v646_v63 = vpop.f32.mrb[2].mxu0 }
 0x4f4   : > { %v1026_v2 = vpop.f32.mrb[3].mxu0 }
 0x506   : > { %v801_v7 = vpop.f32.mrb[0].mxu1 }
 0x507   : > { %v1113_v9 = vadd.f32 %v801_v7, %v646_v63  ;;  %v1064_v23 = vpop.f32.mrb[1].mxu1 }
 0x509   : > { %v810_v1 = vmul.f32 %v1113_v9, %v809_v3 }
 0x50b   : > { %v815_v4 = vadd.f32 %v814_v10, %v810_v1 }
 0x50d   : > { %816 = vst [vmem:[%s247_s8] sm:$0xff] %v815_v4 }
 0x50e   : > { %1256 = shalt.err (!%p1253_p11)
}
 0x50f   : > { %s1257_s14 = scalar_lea.hbm %s1715_s26, 128  ;;  %s1261_s17 = scalar_lea.hbm %s1762_s5, 256 }
 0x510   : > { %p1258_p13 = scmp.ne.s32.totalorder %s1715_s26, %s1257_s14  ;;  %p1262_p6 = scmp.lt.u32.totalorder %s1715_s26, %s1762_s5 }
 0x511   : > { %p1263_p9 = scmp.lt.u32.totalorder %s1261_s17, %s1257_s14  ;;  %p1265_p12 = scmp.lt.u32.totalorder %s1257_s14, %s1715_s26 }
 0x512   : > { %p1259_p5 = pnand %p1258_p13, %p1775_p1 }
 0x513   : > { %p1264_p10 = por %p1263_p9, %p1262_p6 }
 0x514   : > { %p1260_p0 = pneg %p1259_p5 }
 0x515   : > { %p1266_p2 = por %p1265_p12, %p1264_p10 }
 0x517   : > { %p1267_p3 = pnand %p1266_p2, %p1260_p0 }
 0x519   : > { %1270 = shalt.err (!%p1267_p3)
}
 0x51a   : > { %1124 = dma.vmem_to_hbm [thread:$0]  (%p1775_p1), %s1717_s10, 128, %s1715_s26, %s818_s9  }
 0x51b PF: > { %p1141_p4 = scmp.ge.s32.totalorder %s1313_s21, 2  ;;  %s843_s6 = sand.u32 1, %s1301_s18  }
 0x51c   : > { %p1776_p7 = scmp.ne.s32.totalorder %s1767_s29, 0  ;;  %s844_s8 = scalar_lea.sflag [#allocation4], %s843_s6 }
 0x51e   : > { %p1134_p8 = pnand %p1141_p4, %p1776_p7 }
 0x520   : > { %1296 = dma.done.wait (!%p1134_p8), %s844_s8, 128  }
 0x521   : > { %1298 = vsyncadd (!%p1134_p8), %s844_s8, 4294967168  ;;  %p17_p11 = scmp.ge.s32.totalorder %s1382_s24, 4   ;;  %s1777_s18 = smov %s1305_s19 }
 0x522   : > { %s1778_s19 = smov %s1309_s20  ;;  %s1779_s20 = smov %s1393_s27 }
 0x523   : > { %s1780_s21 = smov %s1382_s24  ;;  %19 = sbr.rel (!%p17_p11) target bundleno = 5 (0x5), region = 89 }
 0x52a   :  { %849 = vsyncpa [#allocation3], 1 }
 0x52b   :  { %851 = vsyncpa [#allocation3 + $0x1], 1 }
 0x52c   :  { %852 = vsyncpa [#allocation6], 1 }
 0x52d   :  { %853 = vsyncpa [#allocation4], 1 }
 0x52e   :  { %855 = vsyncpa [#allocation4 + $0x1], 1 }

</bundles_post_ra>
